<compile_context>
chip_gen: v7x
topology: tpu7x:2x2x1
jax: 0.10.0
libtpu: 0.0.40
codegen_flags: <defaults>
</compile_context>

<pallas_src>
import jax
import jax.numpy as jnp
from jax.experimental import pallas as pl
from jax.experimental.pallas import tpu as pltpu

EPS = 1e-5  # PyTorch F.layer_norm default eps


def _make_layernorm_kernel(d_valid, d_padded):
    """Build a LayerNorm kernel over (tile_rows, d_padded) tiles; normalizes
    over the first `d_valid` lanes (d_valid == d_padded => no masking)."""
    need_mask = d_valid != d_padded
    inv_d = 1.0 / float(d_valid)

    def kernel(x_ref, gamma_ref, beta_ref, o_ref):
        x = x_ref[...].astype(jnp.float32)
        g = gamma_ref[...].astype(jnp.float32)
        b = beta_ref[...].astype(jnp.float32)

        if need_mask:
            lane = jax.lax.broadcasted_iota(jnp.int32, x.shape, x.ndim - 1)
            mask = lane < d_valid
            x = jnp.where(mask, x, 0.0)

        # Two-pass mean / variance in f32 (PyTorch-matching numerics).  The
        # tile is resident in VMEM and the kernel is HBM-bound, so the second
        # pass sits in VPU/XLU slack slots.
        mean = jnp.sum(x, axis=-1, keepdims=True) * inv_d
        diff = x - mean
        if need_mask:
            diff = jnp.where(mask, diff, 0.0)
        var = jnp.sum(diff * diff, axis=-1, keepdims=True) * inv_d

        inv = jax.lax.rsqrt(var + EPS)
        o_ref[...] = (diff * inv * g + b).astype(o_ref.dtype)

    return kernel


def _device_kind():
    try:
        return jax.devices()[0].device_kind.lower()
    except Exception:
        return ""


def _num_tensorcores():
    # v7x exposes 2 TensorCores per chip; v5e / v6e have 1.
    return 2 if "v7" in _device_kind() else 1


def _vmem_caps():
    """(block_budget_bytes, vmem_limit_ceiling_bytes) per TPU generation."""
    kind = _device_kind()
    if "v7" in kind:
        # 64 MiB physical VMEM per TensorCore: leave ~12 MiB headroom.
        return 44 << 20, 52 << 20
    if "v5" in kind or "v6" in kind:
        # 128 MiB physical VMEM: bigger blocks are free (single TC, so extra
        # grid steps buy nothing).
        return 88 << 20, 96 << 20
    # Unknown generation: assume the small (v7x-like) VMEM.
    return 44 << 20, 52 << 20


def _choose_tile_rows(R, Dp, itemsize, num_cores, block_budget):
    """Pick a row-tile: the largest block that fits the VMEM budget, with a
    step-count cap only on multi-core parts and only if blocks stay large."""
    # Sublane packing alignment: f32 -> 8, bf16 -> 16, int8/fp8 -> 32.
    align = max(8, 32 // max(1, itemsize))
    if R <= align:
        return R  # single block; full-extent row dim is always legal

    # Per-row VMEM footprint: double-buffered input + output tiles in the
    # native dtype plus ~3 f32-sized intermediates (x_f32, centered diff,
    # normalized result before the final cast).
    bytes_per_row = Dp * (4 * itemsize + 3 * 4)
    rows = max(align, block_budget // bytes_per_row)

    # On a 2-TensorCore part keep >= 2 grid steps per core so the row axis can
    # shard across cores — but only if the block stays >= ~2 MiB (block size
    # wins over step count; sub-1 MiB blocks are pure pipeline overhead).
    if num_cores > 1:
        capped = R // (2 * num_cores)
        if capped * Dp * itemsize >= (2 << 20):
            rows = min(rows, capped)

    rows = min(rows, R)
    rows = max(align, (rows // align) * align)
    return int(rows)


def layer_norm(x, gamma, beta, *, tile_rows=None):
    """LayerNorm over the last dim of x (any rank), matching F.layer_norm."""
    orig_shape = x.shape
    D = orig_shape[-1]
    x2 = x.reshape(-1, D)
    R = x2.shape[0]
    itemsize = jnp.dtype(x2.dtype).itemsize

    # Lane-dense feature dim: pad to the next multiple of 128 if needed (the
    # kernel masks the reduction to the true D).  No-op for model dims x128.
    Dp = ((D + 127) // 128) * 128
    if Dp != D:
        x2 = jnp.pad(x2, ((0, 0), (0, Dp - D)))
        gamma_p = jnp.pad(gamma.reshape(-1), (0, Dp - D))
        beta_p = jnp.pad(beta.reshape(-1), (0, Dp - D))
    else:
        gamma_p = gamma.reshape(-1)
        beta_p = beta.reshape(-1)
    gamma2 = gamma_p.reshape(1, Dp)
    beta2 = beta_p.reshape(1, Dp)

    num_cores = _num_tensorcores()
    block_budget, limit_ceiling = _vmem_caps()
    if tile_rows is None:
        tile_rows = _choose_tile_rows(R, Dp, itemsize, num_cores, block_budget)

    # VMEM limit: double-buffered native in/out tiles, ~3 f32 intermediates,
    # gamma/beta, plus slack — clamped to the per-generation ceiling.
    block_native = tile_rows * Dp * itemsize
    block_f32 = tile_rows * Dp * 4
    vmem_limit = 4 * block_native + 3 * block_f32 + 4 * 2 * Dp * 4 + (8 << 20)
    vmem_limit = int(min(max(vmem_limit, 32 << 20), limit_ceiling))

    n_steps = int(pl.cdiv(R, tile_rows))
    kernel = _make_layernorm_kernel(D, Dp)

    def call(dim_sem):
        return pl.pallas_call(
            kernel,
            out_shape=jax.ShapeDtypeStruct((R, Dp), x2.dtype),
            grid_spec=pltpu.PrefetchScalarGridSpec(
                num_scalar_prefetch=0,
                grid=(n_steps,),
                in_specs=[
                    pl.BlockSpec((tile_rows, Dp), lambda i: (i, 0)),
                    pl.BlockSpec((1, Dp), lambda i: (0, 0)),
                    pl.BlockSpec((1, Dp), lambda i: (0, 0)),
                ],
                out_specs=pl.BlockSpec((tile_rows, Dp), lambda i: (i, 0)),
            ),
            compiler_params=pltpu.CompilerParams(
                dimension_semantics=dim_sem,
                vmem_limit_bytes=vmem_limit,
            ),
        )(x2, gamma2, beta2)

    # On a 2-TensorCore part (v7x) request core-level sharding of the row
    # axis; fall back to the standard "parallel" semantics if rejected.
    if num_cores > 1 and n_steps >= 2 * num_cores:
        try:
            out = call((pltpu.CORE_PARALLEL,))
        except Exception:
            out = call(("parallel",))
    else:
        out = call(("parallel",))

    if Dp != D:
        out = out[:, :D]
    return out.reshape(orig_shape)


if __name__ == "__main__":
    key = jax.random.PRNGKey(0)
    batch, seq, hidden = 2, 8, 32

    x = jax.random.normal(key, (batch, seq, hidden), dtype=jnp.float32)
    # Parameters as in LayerNorm.__init__: gamma = ones(dim), beta = zeros(dim)
    gamma = jnp.ones((hidden,), dtype=jnp.float32)
    beta = jnp.zeros((hidden,), dtype=jnp.float32)

    y = layer_norm(x, gamma, beta)
    y = jax.block_until_ready(y)

    # Reference check (plain JAX) for sanity.
    mean = jnp.mean(x, axis=-1, keepdims=True)
    var = jnp.mean((x - mean) ** 2, axis=-1, keepdims=True)
    ref = (x - mean) / jnp.sqrt(var + EPS) * gamma + beta
    assert jnp.allclose(y, ref, atol=1e-5, rtol=1e-5), "mismatch vs reference"

    print("KERNEL_OK")
</pallas_src>

<mosaic_0001>
module attributes {stable_mosaic.version = 11 : i64} {
  func.func @kernel(%arg0: i32, %arg1: memref<16x128xf32, #tpu.memory_space<vmem>>, %arg2: memref<1x128xf32, #tpu.memory_space<vmem>>, %arg3: memref<1x128xf32, #tpu.memory_space<vmem>>, %arg4: memref<16x128xf32, #tpu.memory_space<vmem>>) attributes {dimension_semantics = [#tpu.dimension_semantics<parallel>], iteration_bounds = array<i64: 1>, scalar_prefetch = 0 : i64, scratch_operands = 0 : i64, tpu.core_type = #tpu.core_type<tc>, window_params = [{transform_indices = @transform_0, window_bounds = array<i64: 16, 128>}, {pipeline_mode = #tpu.pipeline_mode<synchronous>, transform_indices = @transform_1, window_bounds = array<i64: 1, 128>}, {pipeline_mode = #tpu.pipeline_mode<synchronous>, transform_indices = @transform_2, window_bounds = array<i64: 1, 128>}, {transform_indices = @transform_3, window_bounds = array<i64: 16, 128>}]} {
    %c0 = arith.constant 0 : index
    %c0_0 = arith.constant 0 : index
    %0 = vector.load %arg1[%c0, %c0_0] : memref<16x128xf32, #tpu.memory_space<vmem>>, vector<16x128xf32>
    %c0_1 = arith.constant 0 : index
    %c0_2 = arith.constant 0 : index
    %1 = vector.load %arg2[%c0_1, %c0_2] : memref<1x128xf32, #tpu.memory_space<vmem>>, vector<1x128xf32>
    %c0_3 = arith.constant 0 : index
    %c0_4 = arith.constant 0 : index
    %2 = vector.load %arg3[%c0_3, %c0_4] : memref<1x128xf32, #tpu.memory_space<vmem>>, vector<1x128xf32>
    %3 = tpu.iota {dimensions = array<i32: 1>} : vector<16x128xi32>
    %c32_i32 = arith.constant 32 : i32
    %4 = vector.broadcast %c32_i32 : i32 to vector<16x128xi32>
    %5 = arith.cmpi slt, %3, %4 : vector<16x128xi32>
    %cst = arith.constant 0.000000e+00 : f32
    %6 = vector.broadcast %cst : f32 to vector<16x128xf32>
    %7 = arith.select %5, %0, %6 : vector<16x128xi1>, vector<16x128xf32>
    %cst_5 = arith.constant dense<0.000000e+00> : vector<16xf32>
    %8 = vector.multi_reduction <add>, %7, %cst_5 [1] : vector<16x128xf32> to vector<16xf32>
    %9 = vector.shape_cast %8 : vector<16xf32> to vector<16x1xf32>
    %cst_6 = arith.constant 3.125000e-02 : f32
    %10 = vector.broadcast %cst_6 : f32 to vector<16x1xf32>
    %11 = arith.mulf %9, %10 : vector<16x1xf32>
    %12 = vector.broadcast %11 : vector<16x1xf32> to vector<16x128xf32>
    %13 = arith.subf %7, %12 : vector<16x128xf32>
    %cst_7 = arith.constant 0.000000e+00 : f32
    %14 = vector.broadcast %cst_7 : f32 to vector<16x128xf32>
    %15 = arith.select %5, %13, %14 : vector<16x128xi1>, vector<16x128xf32>
    %16 = arith.mulf %15, %15 : vector<16x128xf32>
    %cst_8 = arith.constant dense<0.000000e+00> : vector<16xf32>
    %17 = vector.multi_reduction <add>, %16, %cst_8 [1] : vector<16x128xf32> to vector<16xf32>
    %18 = vector.shape_cast %17 : vector<16xf32> to vector<16x1xf32>
    %cst_9 = arith.constant 3.125000e-02 : f32
    %19 = vector.broadcast %cst_9 : f32 to vector<16x1xf32>
    %20 = arith.mulf %18, %19 : vector<16x1xf32>
    %cst_10 = arith.constant 9.99999974E-6 : f32
    %21 = vector.broadcast %cst_10 : f32 to vector<16x1xf32>
    %22 = arith.addf %20, %21 : vector<16x1xf32>
    %23 = math.rsqrt %22 : vector<16x1xf32>
    %24 = vector.broadcast %23 : vector<16x1xf32> to vector<16x128xf32>
    %25 = arith.mulf %15, %24 : vector<16x128xf32>
    %26 = vector.broadcast %1 : vector<1x128xf32> to vector<16x128xf32>
    %27 = arith.mulf %25, %26 : vector<16x128xf32>
    %28 = vector.broadcast %2 : vector<1x128xf32> to vector<16x128xf32>
    %29 = arith.addf %27, %28 : vector<16x128xf32>
    %c0_11 = arith.constant 0 : index
    %c0_12 = arith.constant 0 : index
    %30 = vector.load %arg4[%c0_11, %c0_12] : memref<16x128xf32, #tpu.memory_space<vmem>>, vector<16x128xf32>
    tpu.vector_store %arg4[%c0_11, %c0_12], %29 {strides = array<i32>} : memref<16x128xf32, #tpu.memory_space<vmem>>, vector<16x128xf32>,
    return
  }
  func.func @transform_0(%arg0: i32) -> (i32, i32) {
    %c0_i32 = arith.constant 0 : i32
    %c0_i32_0 = arith.constant 0 : i32
    return %arg0, %c0_i32 : i32, i32
  }
  func.func @transform_1(%arg0: i32) -> (i32, i32) {
    %c0_i32 = arith.constant 0 : i32
    %c0_i32_0 = arith.constant 0 : i32
    %c0_i32_1 = arith.constant 0 : i32
    return %c0_i32, %c0_i32_0 : i32, i32
  }
  func.func @transform_2(%arg0: i32) -> (i32, i32) {
    %c0_i32 = arith.constant 0 : i32
    %c0_i32_0 = arith.constant 0 : i32
    %c0_i32_1 = arith.constant 0 : i32
    return %c0_i32, %c0_i32_0 : i32, i32
  }
  func.func @transform_3(%arg0: i32) -> (i32, i32) {
    %c0_i32 = arith.constant 0 : i32
    %c0_i32_0 = arith.constant 0 : i32
    return %arg0, %c0_i32 : i32, i32
  }
}

</mosaic_0001>

<bundles_post_ra>
// kernel: tpu_custom_call.1
= control target key start
LH: loop header
LB: loop body
LE: loop exit
PB: predicated region body
PF: predicated region fallthrough
CT: control target
= control target key end

     0   :  { %8 = vsyncpa [#allocation3], 0  ;;  %s219_s0 = inlined_call_operand.hbm [shape: f32[16,128], index: 0, kind: input, shape index: {}]   ;;  %s220_s1 = inlined_call_operand.vmem [shape: f32[1,128], index: 1, kind: input, shape index: {}]   ;;  %s221_s2 = inlined_call_operand.vmem [shape: f32[1,128], index: 2, kind: input, shape index: {}]   ;;  %s222_s3 = inlined_call_operand.hbm [shape: f32[16,128], index: 3, kind: output, shape index: {}]  }
   0x1   :  { %9 = vsyncpa [#allocation4], 0  ;;  %s155_s12 = smov [#allocation2]   ;;  %s107_s16 = scalar_lea.hbm %s219_s0, 256 }
   0x2   :  { %s15_s13 = sshll.u32 %s155_s12, 4  ;;  %p108_p0 = scmp.ne.s32.totalorder %s219_s0, %s107_s16  ;;  %s16_s13 = int_to_ptr.vmem [resolvable:$true] %s15_s13 }
   0x3   :  { %p111_p1 = scmp.lt.u32.totalorder %s107_s16, %s219_s0 }
   0x5   :  { %p113_p2 = pnand %p111_p1, %p108_p0 }
   0x7   :  { %116 = shalt.err (!%p113_p2)
}
   0x8   :  { %s117_s21 = scalar_lea.vmem %s16_s13, 256  ;;  %p122_p4 = scmp.lt.s32.totalorder %s16_s13, %s16_s13 }
   0x9   :  { %p118_p3 = scmp.ne.s32.totalorder %s16_s13, %s117_s21  ;;  %p123_p5 = scmp.lt.s32.totalorder %s117_s21, %s117_s21 }
   0xb   :  { %p124_p6 = por %p123_p5, %p122_p4 }
   0xd   :  { %p125_p7 = pnand %p124_p6, %p118_p3 }
   0xf   :  { %128 = shalt.err (!%p125_p7)
}
  0x10   :  { %s156_s22 = smov 128   ;;  %s157_s23 = smov 8  }
  0x11   :  { %21 = dma.hbm_to_vmem [thread:$0]  %s219_s0, 256, %s16_s13, [#allocation3], %s156_s22, %s156_s22, %s157_s23  }
  0x12   :  { %151 = dma.done.wait [#allocation3], 256  }
  0x13   :  { %152 = vsyncadd [#allocation3], 4294967040  ;;  %v33_v0 = vlaneseq  ;;  %v29_v2 = vld [vmem:[#allocation2] sm:$0xff]  ;;  %v30_v3 = vld [vmem:[#allocation2 + $0x8] sm:$0xff]  ;;  %s158_s29 = smov [#allocation5]  }
  0x14   :  { %v97_v23 = vld [vmem:[%s220_s1] ss:$0 sm:$0xff]  ;;  %s85_s30 = sshll.u32 %s158_s29, 4  ;;  %s86_s30 = int_to_ptr.vmem [resolvable:$true] %s85_s30 }
  0x15   :  { %v34_v1 = vand.u32 127, %v33_v0  ;;  %v98_v25 = vld [vmem:[%s221_s2] ss:$0 sm:$0xff]  ;;  %s129_s4 = scalar_lea.vmem %s86_s30, 256  ;;  %p134_p9 = scmp.lt.s32.totalorder %s86_s30, %s86_s30 }
  0x16   :  { %p130_p8 = scmp.ne.s32.totalorder %s86_s30, %s129_s4  ;;  %p135_p10 = scmp.lt.s32.totalorder %s129_s4, %s129_s4 }
  0x17   :  { %vm35_vm0 = vcmp.lt.s32.totalorder %v34_v1, 32 }
  0x18   :  { %v36_v4 = vsel %vm35_vm0, %v29_v2, 0.0  ;;  %v37_v5 = vsel %vm35_vm0, %v30_v3, 0.0  ;;  %p136_p11 = por %p135_p10, %p134_p9 }
  0x19   :  { %38 = vadd.xlane.f32.xlu0 %v36_v4 }
  0x1a   :  { %p137_p12 = pnand %p136_p11, %p130_p8 }
  0x1d   :  { %40 = vadd.xlane.f32.xlu0 %v37_v5 }
  0xa6   :  { %v39_v6 = vpop.xlane.xlu0 %38 }
  0xa7   :  { %v42_v7 = vmul.f32 0.03125, %v39_v6 }
  0xa9   :  { %v44_v8 = vsub.f32 %v36_v4, %v42_v7 }
  0xaa   :  { %v41_v9 = vpop.xlane.xlu0 %40 }
  0xab   :  { %v43_v10 = vmul.f32 0.03125, %v41_v9  ;;  %v46_v11 = vsel %vm35_vm0, %v44_v8, 0.0 }
  0xac   :  { %v48_v12 = vmul.f32 %v46_v11, %v46_v11 }
  0xad   :  { %v45_v13 = vsub.f32 %v37_v5, %v43_v10 }
  0xae   :  { %50 = vadd.xlane.f32.xlu1 %v48_v12 }
  0xaf   :  { %v47_v14 = vsel %vm35_vm0, %v45_v13, 0.0 }
  0xb0   :  { %v49_v15 = vmul.f32 %v47_v14, %v47_v14 }
  0xb2   :  { %52 = vadd.xlane.f32.xlu1 %v49_v15 }
 0x13b   :  { %v51_v16 = vpop.xlane.xlu1 %50 }
 0x13c   :  { %v54_v17 = vmul.f32 0.03125, %v51_v16 }
 0x13e   :  { %v56_v18 = vadd.f32 1e-05, %v54_v17 }
 0x13f   :  { %v53_v19 = vpop.xlane.xlu1 %52 }
 0x140   :  { %103 = vrsqrt.f32 %v56_v18  ;;  %v55_v20 = vmul.f32 0.03125, %v53_v19 }
 0x142   :  { %v57_v21 = vadd.f32 1e-05, %v55_v20 }
 0x144   :  { %105 = vrsqrt.f32 %v57_v21 }
 0x14a   :  { %v104_v22 = vpop.eup %103 }
 0x14b   :  { %v60_v24 = vmul.f32 %v104_v22, %v46_v11 }
 0x14d   :  { %v68_v26 = vmul.f32 %v97_v23, %v60_v24 }
 0x14e   :  { %v106_v27 = vpop.eup %105 }
 0x14f   :  { %v61_v28 = vmul.f32 %v106_v27, %v47_v14  ;;  %v76_v29 = vadd.f32 %v98_v25, %v68_v26 }
 0x151   :  { %v69_v30 = vmul.f32 %v97_v23, %v61_v28  ;;  %78 = vst [vmem:[#allocation5] sm:$0xff] %v76_v29 }
 0x153   :  { %v77_v31 = vadd.f32 %v98_v25, %v69_v30 }
 0x155   :  { %79 = vst [vmem:[#allocation5 + $0x8] sm:$0xff] %v77_v31 }
 0x156   :  { %140 = shalt.err (!%p137_p12)
}
 0x157   :  { %s141_s5 = scalar_lea.hbm %s222_s3, 256 }
 0x158   :  { %p142_p13 = scmp.ne.s32.totalorder %s222_s3, %s141_s5  ;;  %p145_p0 = scmp.lt.u32.totalorder %s141_s5, %s222_s3 }
 0x15a   :  { %p147_p1 = pnand %p145_p0, %p142_p13 }
 0x15c   :  { %150 = shalt.err (!%p147_p1)
}
 0x15d   :  { %91 = dma.vmem_to_hbm [thread:$0]  %s86_s30, 256, %s222_s3, [#allocation4], %s156_s22, %s156_s22, %s157_s23  }
 0x15e   :  { %153 = dma.done.wait [#allocation4], 256  }
 0x15f   :  { %154 = vsyncadd [#allocation4], 4294967040 }
 0x160   :  { %95 = vsyncpa [#allocation3], 1 }
 0x161   :  { %96 = vsyncpa [#allocation4], 1 }

</bundles_post_ra>
